<compile_context>
chip_gen: v7x
topology: tpu7x:2x2x1
jax: 0.10.0
libtpu: 0.0.40
codegen_flags: <defaults>
</compile_context>

<pallas_src>
import numpy as np
import jax
import jax.numpy as jnp
from jax.experimental import pallas as pl
from jax.experimental.pallas import tpu as pltpu


# ----------------------------- Pallas kernels --------------------------------
def bigcn_branch_kernel(AT_ref, W1T_ref, b1T_ref, W2aT_ref, W2bT_ref, b2T_ref,
                        xT_ref, xrootT_ref, UT_ref, MT_ref, ST_ref, out_ref):
    """One rumor-GCN branch (TD or BU), fully H-major: features on sublanes,
    the large node dimension N on the 128-lane axis."""
    f32, bf16 = jnp.float32, jnp.bfloat16
    H = W2aT_ref.shape[0]                                   # nhid

    AT = AT_ref[...]                                        # (N, N)  bf16 == A_hat^T
    xT = xT_ref[...]                                        # (Fin, N) f32 == x^T

    # conv1:  h1^T = (x @ W1)^T @ A^T + b1^T  ->  (H, N);  one bf16 cast per operand.
    xW1T = jnp.dot(W1T_ref[...], xT, preferred_element_type=f32)            # (H, N)
    h1T = jnp.dot(xW1T.astype(bf16), AT, preferred_element_type=f32) + b1T_ref[...]
    aT = jnp.maximum(h1T, 0.0)                                               # relu(h1)

    # conv2 on relu(cat(h1, root_extend(x))) with dropout == identity (eval mode):
    #   cat(relu(h1), relu(R@x)) @ W2 == relu(h1) @ W2a + U @ (relu(x_root) @ W2b)
    rprojT = jnp.dot(W2bT_ref[...], jnp.maximum(xrootT_ref[...], 0.0),
                     preferred_element_type=f32)                             # (H, B)
    pre2T = (jnp.dot(W2aT_ref[...], aT, preferred_element_type=f32)
             + jnp.dot(rprojT, UT_ref[...], preferred_element_type=f32))     # (H, N)
    h2T = jnp.maximum(
        jnp.dot(pre2T.astype(bf16), AT, preferred_element_type=f32) + b2T_ref[...],
        0.0)                                                                  # (H, N)

    # scatter_mean over graphs of cat(h2, root_extend(x2 = h1)):
    #   (M @ h2)^T = h2^T @ M^T ;  (M @ R @ h1)^T = h1^T @ S^T   (since M @ U == I_B)
    g1T = jnp.dot(h2T, MT_ref[...], preferred_element_type=f32)              # (H, B)
    g2T = jnp.dot(h1T, ST_ref[...], preferred_element_type=f32)              # (H, B)
    out_ref[pl.ds(0, H), :] = g1T
    out_ref[pl.ds(H, H), :] = g2T


def fc_logsoftmax_kernel(g_ref, Wfc_ref, bfc_ref, out_ref):
    f32 = jnp.float32
    logits = jnp.dot(g_ref[...], Wfc_ref[...], preferred_element_type=f32) + bfc_ref[...]
    m = jnp.max(logits, axis=1, keepdims=True)
    lse = m + jnp.log(jnp.sum(jnp.exp(logits - m), axis=1, keepdims=True))
    out_ref[...] = logits - lse


# ------------------------------ Wrapper / glue --------------------------------
def _padded_bytes(shape, dtype):
    """Approximate VMEM footprint with (8, 128) tile padding of the last two dims."""
    s = [int(d) for d in shape]
    if len(s) == 1:
        s = [1] + s
    s[-1] = -(-s[-1] // 128) * 128
    s[-2] = -(-s[-2] // 8) * 8
    n = 1
    for d in s:
        n *= d
    return n * jnp.dtype(dtype).itemsize


def bigcn_forward(x, A_td, A_bu, batch, root_index, p, nhid, num_classes):
    N, Fin = x.shape
    B = int(root_index.shape[0])
    H = int(nhid)
    f32, bf16 = jnp.float32, jnp.bfloat16

    # Structural operators.  Precondition (asserted by construction here): `batch`
    # holds exact graph ids in [0, B) with >= 1 node per graph, and root_index[b]
    # is a node of graph b -> U is an exact one-hot and M @ U == I_B.
    U = jax.nn.one_hot(batch, B, dtype=f32)                    # (N, B)
    counts = jnp.maximum(jnp.sum(U, axis=0), 1.0)              # guard empty graphs
    UT = U.T                                                   # (B, N)
    MT = U / counts[None, :]                                   # (N, B) == (mean-pool M)^T
    ST = jax.nn.one_hot(root_index, N, dtype=f32).T            # (N, B) == (root one-hot S)^T

    # Transposed adjacency in bf16 (dominant, memory-bound operands).
    AT_all = jnp.stack([A_td.T, A_bu.T]).astype(bf16)          # (2, N, N)

    xT = x.T                                                   # (Fin, N)
    xrootT = x[root_index].T                                   # (Fin, B) root features

    # H-major (transposed) per-branch weights, stacked on a branch axis.
    W1T_all = jnp.stack([p["W1_td"].T, p["W1_bu"].T])                          # (2, H, Fin)
    b1T_all = jnp.stack([p["b1_td"].T, p["b1_bu"].T])                          # (2, H, 1)
    W2aT_all = jnp.stack([p["W2_td"][:H].T, p["W2_bu"][:H].T])                 # (2, H, H)
    W2bT_all = jnp.stack([p["W2_td"][H:H + Fin].T, p["W2_bu"][H:H + Fin].T])   # (2, H, Fin)
    b2T_all = jnp.stack([p["b2_td"].T, p["b2_bu"].T])                          # (2, H, 1)

    branch_inputs = (AT_all, W1T_all, b1T_all, W2aT_all, W2bT_all, b2T_all,
                     xT, xrootT, UT, MT, ST)

    # VMEM budget from the actual resident set of one grid step (double-buffered
    # inputs + live (H, N) activations), capped below the physical per-generation VMEM.
    resident = 2 * _padded_bytes((N, N), bf16)                   # A^T tile (2 buffers)
    for arr, per_branch in ((W1T_all, True), (b1T_all, True), (W2aT_all, True),
                            (W2bT_all, True), (b2T_all, True),
                            (xT, False), (xrootT, False), (UT, False),
                            (MT, False), (ST, False)):
        blk = arr.shape[1:] if per_branch else arr.shape
        resident += 2 * _padded_bytes(blk, arr.dtype)
    resident += 6 * _padded_bytes((H, N), f32)                   # xW1T/h1T/aT/pre2T/h2T/...
    resident += 2 * _padded_bytes((2 * H, B), f32)               # output block
    try:
        vmem_phys = int(pltpu.get_tpu_info().vmem_capacity_bytes)
    except Exception:
        vmem_phys = 64 << 20                                     # v7x-safe fallback
    vmem_cap = (vmem_phys * 3) // 4                              # headroom for scratch
    vmem_limit = int(min(max(resident + (4 << 20), 16 << 20), vmem_cap))

    flops_branch = (2 * H * Fin * N          # W1^T @ x^T
                    + 2 * 2 * H * N * N      # two A^T matmuls
                    + 2 * H * H * N          # W2a^T @ a^T
                    + 2 * H * Fin * B        # root projection
                    + 2 * H * B * N          # root broadcast
                    + 2 * 2 * H * N * B)     # pooling
    bytes_in = sum(int(a.size) * a.dtype.itemsize for a in branch_inputs)
    cost = pl.CostEstimate(flops=2 * flops_branch, transcendentals=0,
                           bytes_accessed=bytes_in + 2 * 2 * H * B * 4)

    def bspec(shape):                         # per-branch stacked input
        z = (0,) * len(shape)
        return pl.BlockSpec((None,) + tuple(shape), lambda i, _z=z: (i,) + _z)

    def sspec(shape):                         # shared input (fetched once)
        z = (0,) * len(shape)
        return pl.BlockSpec(tuple(shape), lambda i, _z=z: _z)

    pooled = pl.pallas_call(
        bigcn_branch_kernel,
        out_shape=jax.ShapeDtypeStruct((2, 2 * H, B), f32),
        grid=(2,),                             # branch axis: TD / BU
        in_specs=[
            bspec((N, N)),                     # A^T
            bspec((H, Fin)),                   # W1^T
            bspec((H, 1)),                     # b1^T
            bspec((H, H)),                     # W2a^T
            bspec((H, Fin)),                   # W2b^T
            bspec((H, 1)),                     # b2^T
            sspec((Fin, N)),                   # x^T
            sspec((Fin, B)),                   # x_root^T
            sspec((B, N)),                     # U^T
            sspec((N, B)),                     # M^T
            sspec((N, B)),                     # S^T
        ],
        out_specs=pl.BlockSpec((None, 2 * H, B), lambda i: (i, 0, 0)),
        compiler_params=pltpu.CompilerParams(
            dimension_semantics=("parallel",),  # one TC per branch on v7x megacore
            vmem_limit_bytes=vmem_limit),
        cost_estimate=cost,
    )(*branch_inputs)

    # (2, 2H, B) -> (B, 4H) with column order [TD(g1|g2) | BU(g1|g2)]  (tiny XLA glue)
    g = jnp.transpose(pooled, (2, 0, 1)).reshape(B, 4 * H)

    vmem = pl.BlockSpec(memory_space=pltpu.MemorySpace.VMEM)
    return pl.pallas_call(
        fc_logsoftmax_kernel,
        out_shape=jax.ShapeDtypeStruct((B, num_classes), f32),
        in_specs=[vmem, vmem, vmem],
        out_specs=vmem,
    )(g, p["Wfc"], p["bfc"])


# ------------------------------ Plain-JAX reference ---------------------------
def gcn_norm_dense(src, dst, n):
    """PyG GCNConv normalization, densified: A_hat[j, i] for edge i -> j."""
    A = jnp.zeros((n, n), jnp.float32).at[dst, src].add(1.0)
    A = A + jnp.eye(n, dtype=jnp.float32)                # add self loops
    deg = jnp.sum(A, axis=1)
    dinv = jnp.where(deg > 0, 1.0 / jnp.sqrt(deg), 0.0)
    return A * dinv[:, None] * dinv[None, :]


def reference_forward(x, A_td, A_bu, R, M, p, *, spmm_dtype=jnp.float32):
    """Pure-JAX reference mirroring the PyTorch forward (eval mode)."""
    f32 = jnp.float32

    def spmm(A, Y):
        return jnp.dot(A.astype(spmm_dtype), Y.astype(spmm_dtype),
                       preferred_element_type=f32)

    def branch(A, W1, b1, W2, b2):
        h1 = spmm(A, x @ W1) + b1
        x2 = h1
        h = jax.nn.relu(jnp.concatenate([h1, R @ x], axis=1))
        h2 = jax.nn.relu(spmm(A, h @ W2) + b2)
        h = jnp.concatenate([h2, R @ x2], axis=1)
        return M @ h

    td = branch(A_td, p["W1_td"], p["b1_td"], p["W2_td"], p["b2_td"])
    bu = branch(A_bu, p["W1_bu"], p["b1_bu"], p["W2_bu"], p["b2_bu"])
    g = jnp.concatenate([td, bu], axis=1)
    return jax.nn.log_softmax(g @ p["Wfc"] + p["bfc"], axis=1)


if __name__ == "__main__":
    # small config: num_features=16, nhid=32, num_classes=4
    num_features, nhid, num_classes = 16, 32, 4
    nodes_per_graph, num_graphs = 12, 2
    N = nodes_per_graph * num_graphs

    # synthetic batched tree graphs (top-down edges parent -> child)
    src_list, dst_list = [], []
    for gidx in range(num_graphs):
        off = gidx * nodes_per_graph
        for i in range(1, nodes_per_graph):
            src_list.append(off + (i - 1) // 2)   # parent
            dst_list.append(off + i)              # child
    src = jnp.array(src_list, jnp.int32)
    dst = jnp.array(dst_list, jnp.int32)
    batch = jnp.array([gi for gi in range(num_graphs) for _ in range(nodes_per_graph)],
                      jnp.int32)
    root_index = jnp.array([gi * nodes_per_graph for gi in range(num_graphs)], jnp.int32)

    # dense structural operators
    A_td = gcn_norm_dense(src, dst, N)            # TD: parent -> child
    A_bu = gcn_norm_dense(dst, src, N)            # BU: reversed edges

    # deterministic synthetic parameters
    key = jax.random.PRNGKey(0)
    ks = jax.random.split(key, 12)

    def init(k, shape):
        fan_in = shape[0]
        return (jax.random.normal(k, shape, jnp.float32) / np.sqrt(fan_in)).astype(jnp.float32)

    p = {
        "W1_td": init(ks[0], (num_features, nhid)),
        "b1_td": init(ks[1], (1, nhid)) * 0.1,
        "W2_td": init(ks[2], (nhid + num_features, nhid)),
        "b2_td": init(ks[3], (1, nhid)) * 0.1,
        "W1_bu": init(ks[4], (num_features, nhid)),
        "b1_bu": init(ks[5], (1, nhid)) * 0.1,
        "W2_bu": init(ks[6], (nhid + num_features, nhid)),
        "b2_bu": init(ks[7], (1, nhid)) * 0.1,
        "Wfc": init(ks[8], (4 * nhid, num_classes)),
        "bfc": init(ks[9], (1, num_classes)) * 0.1,
    }

    # node features
    x = jax.random.normal(ks[10], (N, num_features), jnp.float32)

    out = jax.block_until_ready(
        bigcn_forward(x, A_td, A_bu, batch, root_index, p, nhid, num_classes))

    # references: dense R / mean-pool M only built here for the checks
    R = jax.nn.one_hot(root_index[batch], N, dtype=jnp.float32)          # (N, N)
    onehot_b = jax.nn.one_hot(batch, num_graphs, dtype=jnp.float32).T    # (B, N)
    M = onehot_b / jnp.sum(onehot_b, axis=1, keepdims=True)

    # (1) tight-ish check vs. a reference using the same bf16 adjacency precision
    ref_match = jax.block_until_ready(
        reference_forward(x, A_td, A_bu, R, M, p, spmm_dtype=jnp.bfloat16))
    np.testing.assert_allclose(np.asarray(out), np.asarray(ref_match),
                               rtol=1e-2, atol=1e-2)

    # (2) semantics check vs. the faithful f32 reference (bf16 drift budgeted)
    ref_f32 = jax.block_until_ready(
        reference_forward(x, A_td, A_bu, R, M, p, spmm_dtype=jnp.float32))
    np.testing.assert_allclose(np.asarray(out), np.asarray(ref_f32),
                               rtol=4e-2, atol=4e-2)

    print("KERNEL_OK")
</pallas_src>

<mosaic_0001>
module attributes {stable_mosaic.version = 11 : i64} {
  func.func @bigcn_branch_kernel(%arg0: i32, %arg1: memref<1x24x24xbf16, #tpu.memory_space<vmem>>, %arg2: memref<1x32x16xf32, #tpu.memory_space<vmem>>, %arg3: memref<1x32x1xf32, #tpu.memory_space<vmem>>, %arg4: memref<1x32x32xf32, #tpu.memory_space<vmem>>, %arg5: memref<1x32x16xf32, #tpu.memory_space<vmem>>, %arg6: memref<1x32x1xf32, #tpu.memory_space<vmem>>, %arg7: memref<16x24xf32, #tpu.memory_space<vmem>>, %arg8: memref<16x2xf32, #tpu.memory_space<vmem>>, %arg9: memref<2x24xf32, #tpu.memory_space<vmem>>, %arg10: memref<24x2xf32, #tpu.memory_space<vmem>>, %arg11: memref<24x2xf32, #tpu.memory_space<vmem>>, %arg12: memref<1x64x2xf32, #tpu.memory_space<vmem>>) attributes {dimension_semantics = [#tpu.dimension_semantics<parallel>], iteration_bounds = array<i64: 2>, scalar_prefetch = 0 : i64, scratch_operands = 0 : i64, tpu.core_type = #tpu.core_type<tc>, window_params = [{transform_indices = @transform_0, window_bounds = array<i64: 1, 24, 24>}, {transform_indices = @transform_1, window_bounds = array<i64: 1, 32, 16>}, {transform_indices = @transform_2, window_bounds = array<i64: 1, 32, 1>}, {transform_indices = @transform_3, window_bounds = array<i64: 1, 32, 32>}, {transform_indices = @transform_4, window_bounds = array<i64: 1, 32, 16>}, {transform_indices = @transform_5, window_bounds = array<i64: 1, 32, 1>}, {pipeline_mode = #tpu.pipeline_mode<synchronous>, transform_indices = @transform_6, window_bounds = array<i64: 16, 24>}, {pipeline_mode = #tpu.pipeline_mode<synchronous>, transform_indices = @transform_7, window_bounds = array<i64: 16, 2>}, {pipeline_mode = #tpu.pipeline_mode<synchronous>, transform_indices = @transform_8, window_bounds = array<i64: 2, 24>}, {pipeline_mode = #tpu.pipeline_mode<synchronous>, transform_indices = @transform_9, window_bounds = array<i64: 24, 2>}, {pipeline_mode = #tpu.pipeline_mode<synchronous>, transform_indices = @transform_10, window_bounds = array<i64: 24, 2>}, {transform_indices = @transform_11, window_bounds = array<i64: 1, 64, 2>}]} {
    %c0 = arith.constant 0 : index
    %c0_0 = arith.constant 0 : index
    %c0_1 = arith.constant 0 : index
    %0 = vector.load %arg1[%c0, %c0_0, %c0_1] : memref<1x24x24xbf16, #tpu.memory_space<vmem>>, vector<1x24x24xbf16>
    %1 = vector.shape_cast %0 : vector<1x24x24xbf16> to vector<24x24xbf16>
    %c0_2 = arith.constant 0 : index
    %c0_3 = arith.constant 0 : index
    %2 = vector.load %arg7[%c0_2, %c0_3] : memref<16x24xf32, #tpu.memory_space<vmem>>, vector<16x24xf32>
    %c0_4 = arith.constant 0 : index
    %c0_5 = arith.constant 0 : index
    %c0_6 = arith.constant 0 : index
    %3 = vector.load %arg2[%c0_4, %c0_5, %c0_6] : memref<1x32x16xf32, #tpu.memory_space<vmem>>, vector<1x32x16xf32>
    %4 = vector.shape_cast %3 : vector<1x32x16xf32> to vector<32x16xf32>
    %cst = arith.constant dense<0.000000e+00> : vector<32x24xf32>
    %5 = tpu.matmul %4, %2, %cst {dimension_numbers = #tpu.dot_dimension_numbers<[1], [0], [0], [1], [0, 0, 1, 1], [], []>} : vector<32x16xf32>, vector<16x24xf32>, vector<32x24xf32> -> vector<32x24xf32>
    %6 = arith.truncf %5 : vector<32x24xf32> to vector<32x24xbf16>
    %cst_7 = arith.constant dense<0.000000e+00> : vector<32x24xf32>
    %7 = tpu.matmul %6, %1, %cst_7 {dimension_numbers = #tpu.dot_dimension_numbers<[1], [0], [0], [1], [0, 0, 1, 1], [], []>} : vector<32x24xbf16>, vector<24x24xbf16>, vector<32x24xf32> -> vector<32x24xf32>
    %c0_8 = arith.constant 0 : index
    %c0_9 = arith.constant 0 : index
    %c0_10 = arith.constant 0 : index
    %8 = vector.load %arg3[%c0_8, %c0_9, %c0_10] : memref<1x32x1xf32, #tpu.memory_space<vmem>>, vector<1x32x1xf32>
    %9 = vector.shape_cast %8 : vector<1x32x1xf32> to vector<32x1xf32>
    %10 = vector.broadcast %9 : vector<32x1xf32> to vector<32x24xf32>
    %11 = arith.addf %7, %10 : vector<32x24xf32>
    %cst_11 = arith.constant 0.000000e+00 : f32
    %12 = vector.broadcast %cst_11 : f32 to vector<32x24xf32>
    %13 = arith.maximumf %11, %12 : vector<32x24xf32>
    %c0_12 = arith.constant 0 : index
    %c0_13 = arith.constant 0 : index
    %c0_14 = arith.constant 0 : index
    %14 = vector.load %arg5[%c0_12, %c0_13, %c0_14] : memref<1x32x16xf32, #tpu.memory_space<vmem>>, vector<1x32x16xf32>
    %15 = vector.shape_cast %14 : vector<1x32x16xf32> to vector<32x16xf32>
    %c0_15 = arith.constant 0 : index
    %c0_16 = arith.constant 0 : index
    %16 = vector.load %arg8[%c0_15, %c0_16] : memref<16x2xf32, #tpu.memory_space<vmem>>, vector<16x2xf32>
    %cst_17 = arith.constant 0.000000e+00 : f32
    %17 = vector.broadcast %cst_17 : f32 to vector<16x2xf32>
    %18 = arith.maximumf %16, %17 : vector<16x2xf32>
    %cst_18 = arith.constant dense<0.000000e+00> : vector<32x2xf32>
    %19 = tpu.matmul %15, %18, %cst_18 {dimension_numbers = #tpu.dot_dimension_numbers<[1], [0], [0], [1], [0, 0, 1, 1], [], []>} : vector<32x16xf32>, vector<16x2xf32>, vector<32x2xf32> -> vector<32x2xf32>
    %c0_19 = arith.constant 0 : index
    %c0_20 = arith.constant 0 : index
    %c0_21 = arith.constant 0 : index
    %20 = vector.load %arg4[%c0_19, %c0_20, %c0_21] : memref<1x32x32xf32, #tpu.memory_space<vmem>>, vector<1x32x32xf32>
    %21 = vector.shape_cast %20 : vector<1x32x32xf32> to vector<32x32xf32>
    %cst_22 = arith.constant dense<0.000000e+00> : vector<32x24xf32>
    %22 = tpu.matmul %21, %13, %cst_22 {dimension_numbers = #tpu.dot_dimension_numbers<[1], [0], [0], [1], [0, 0, 1, 1], [], []>} : vector<32x32xf32>, vector<32x24xf32>, vector<32x24xf32> -> vector<32x24xf32>
    %c0_23 = arith.constant 0 : index
    %c0_24 = arith.constant 0 : index
    %23 = vector.load %arg9[%c0_23, %c0_24] : memref<2x24xf32, #tpu.memory_space<vmem>>, vector<2x24xf32>
    %cst_25 = arith.constant dense<0.000000e+00> : vector<32x24xf32>
    %24 = tpu.matmul %19, %23, %cst_25 {dimension_numbers = #tpu.dot_dimension_numbers<[1], [0], [0], [1], [0, 0, 1, 1], [], []>} : vector<32x2xf32>, vector<2x24xf32>, vector<32x24xf32> -> vector<32x24xf32>
    %25 = arith.addf %22, %24 : vector<32x24xf32>
    %26 = arith.truncf %25 : vector<32x24xf32> to vector<32x24xbf16>
    %cst_26 = arith.constant dense<0.000000e+00> : vector<32x24xf32>
    %27 = tpu.matmul %26, %1, %cst_26 {dimension_numbers = #tpu.dot_dimension_numbers<[1], [0], [0], [1], [0, 0, 1, 1], [], []>} : vector<32x24xbf16>, vector<24x24xbf16>, vector<32x24xf32> -> vector<32x24xf32>
    %c0_27 = arith.constant 0 : index
    %c0_28 = arith.constant 0 : index
    %c0_29 = arith.constant 0 : index
    %28 = vector.load %arg6[%c0_27, %c0_28, %c0_29] : memref<1x32x1xf32, #tpu.memory_space<vmem>>, vector<1x32x1xf32>
    %29 = vector.shape_cast %28 : vector<1x32x1xf32> to vector<32x1xf32>
    %30 = vector.broadcast %29 : vector<32x1xf32> to vector<32x24xf32>
    %31 = arith.addf %27, %30 : vector<32x24xf32>
    %cst_30 = arith.constant 0.000000e+00 : f32
    %32 = vector.broadcast %cst_30 : f32 to vector<32x24xf32>
    %33 = arith.maximumf %31, %32 : vector<32x24xf32>
    %c0_31 = arith.constant 0 : index
    %c0_32 = arith.constant 0 : index
    %34 = vector.load %arg10[%c0_31, %c0_32] : memref<24x2xf32, #tpu.memory_space<vmem>>, vector<24x2xf32>
    %cst_33 = arith.constant dense<0.000000e+00> : vector<32x2xf32>
    %35 = tpu.matmul %33, %34, %cst_33 {dimension_numbers = #tpu.dot_dimension_numbers<[1], [0], [0], [1], [0, 0, 1, 1], [], []>} : vector<32x24xf32>, vector<24x2xf32>, vector<32x2xf32> -> vector<32x2xf32>
    %c0_34 = arith.constant 0 : index
    %c0_35 = arith.constant 0 : index
    %36 = vector.load %arg11[%c0_34, %c0_35] : memref<24x2xf32, #tpu.memory_space<vmem>>, vector<24x2xf32>
    %cst_36 = arith.constant dense<0.000000e+00> : vector<32x2xf32>
    %37 = tpu.matmul %11, %36, %cst_36 {dimension_numbers = #tpu.dot_dimension_numbers<[1], [0], [0], [1], [0, 0, 1, 1], [], []>} : vector<32x24xf32>, vector<24x2xf32>, vector<32x2xf32> -> vector<32x2xf32>
    %c0_37 = arith.constant 0 : index
    %c0_38 = arith.constant 0 : index
    %c0_39 = arith.constant 0 : index
    %38 = vector.load %arg12[%c0_37, %c0_38, %c0_39] : memref<1x64x2xf32, #tpu.memory_space<vmem>>, vector<1x32x2xf32>
    %39 = vector.shape_cast %38 : vector<1x32x2xf32> to vector<32x2xf32>
    %40 = vector.shape_cast %35 : vector<32x2xf32> to vector<1x32x2xf32>
    tpu.vector_store %arg12[%c0_37, %c0_38, %c0_39], %40 {strides = array<i32>} : memref<1x64x2xf32, #tpu.memory_space<vmem>>, vector<1x32x2xf32>,
    %c0_40 = arith.constant 0 : index
    %c32 = arith.constant 32 : index
    %c0_41 = arith.constant 0 : index
    %41 = vector.load %arg12[%c0_40, %c32, %c0_41] : memref<1x64x2xf32, #tpu.memory_space<vmem>>, vector<1x32x2xf32>
    %42 = vector.shape_cast %41 : vector<1x32x2xf32> to vector<32x2xf32>
    %43 = vector.shape_cast %37 : vector<32x2xf32> to vector<1x32x2xf32>
    tpu.vector_store %arg12[%c0_40, %c32, %c0_41], %43 {strides = array<i32>} : memref<1x64x2xf32, #tpu.memory_space<vmem>>, vector<1x32x2xf32>,
    return
  }
  func.func @transform_0(%arg0: i32) -> (i32, i32, i32) {
    %c0_i32 = arith.constant 0 : i32
    %c0_i32_0 = arith.constant 0 : i32
    %c0_i32_1 = arith.constant 0 : i32
    return %arg0, %c0_i32, %c0_i32_0 : i32, i32, i32
  }
  func.func @transform_1(%arg0: i32) -> (i32, i32, i32) {
    %c0_i32 = arith.constant 0 : i32
    %c0_i32_0 = arith.constant 0 : i32
    %c0_i32_1 = arith.constant 0 : i32
    return %arg0, %c0_i32, %c0_i32_0 : i32, i32, i32
  }
  func.func @transform_2(%arg0: i32) -> (i32, i32, i32) {
    %c0_i32 = arith.constant 0 : i32
    %c0_i32_0 = arith.constant 0 : i32
    %c0_i32_1 = arith.constant 0 : i32
    return %arg0, %c0_i32, %c0_i32_0 : i32, i32, i32
  }
  func.func @transform_3(%arg0: i32) -> (i32, i32, i32) {
    %c0_i32 = arith.constant 0 : i32
    %c0_i32_0 = arith.constant 0 : i32
    %c0_i32_1 = arith.constant 0 : i32
    return %arg0, %c0_i32, %c0_i32_0 : i32, i32, i32
  }
  func.func @transform_4(%arg0: i32) -> (i32, i32, i32) {
    %c0_i32 = arith.constant 0 : i32
    %c0_i32_0 = arith.constant 0 : i32
    %c0_i32_1 = arith.constant 0 : i32
    return %arg0, %c0_i32, %c0_i32_0 : i32, i32, i32
  }
  func.func @transform_5(%arg0: i32) -> (i32, i32, i32) {
    %c0_i32 = arith.constant 0 : i32
    %c0_i32_0 = arith.constant 0 : i32
    %c0_i32_1 = arith.constant 0 : i32
    return %arg0, %c0_i32, %c0_i32_0 : i32, i32, i32
  }
  func.func @transform_6(%arg0: i32) -> (i32, i32) {
    %c0_i32 = arith.constant 0 : i32
    %c0_i32_0 = arith.constant 0 : i32
    %c0_i32_1 = arith.constant 0 : i32
    return %c0_i32, %c0_i32_0 : i32, i32
  }
  func.func @transform_7(%arg0: i32) -> (i32, i32) {
    %c0_i32 = arith.constant 0 : i32
    %c0_i32_0 = arith.constant 0 : i32
    %c0_i32_1 = arith.constant 0 : i32
    return %c0_i32, %c0_i32_0 : i32, i32
  }
  func.func @transform_8(%arg0: i32) -> (i32, i32) {
    %c0_i32 = arith.constant 0 : i32
    %c0_i32_0 = arith.constant 0 : i32
    %c0_i32_1 = arith.constant 0 : i32
    return %c0_i32, %c0_i32_0 : i32, i32
  }
  func.func @transform_9(%arg0: i32) -> (i32, i32) {
    %c0_i32 = arith.constant 0 : i32
    %c0_i32_0 = arith.constant 0 : i32
    %c0_i32_1 = arith.constant 0 : i32
    return %c0_i32, %c0_i32_0 : i32, i32
  }
  func.func @transform_10(%arg0: i32) -> (i32, i32) {
    %c0_i32 = arith.constant 0 : i32
    %c0_i32_0 = arith.constant 0 : i32
    %c0_i32_1 = arith.constant 0 : i32
    return %c0_i32, %c0_i32_0 : i32, i32
  }
  func.func @transform_11(%arg0: i32) -> (i32, i32, i32) {
    %c0_i32 = arith.constant 0 : i32
    %c0_i32_0 = arith.constant 0 : i32
    %c0_i32_1 = arith.constant 0 : i32
    return %arg0, %c0_i32, %c0_i32_0 : i32, i32, i32
  }
}

</mosaic_0001>

<bundles_post_ra>
// kernel: tpu_custom_call.1
= control target key start
LH: loop header
LB: loop body
LE: loop exit
PB: predicated region body
PF: predicated region fallthrough
CT: control target
= control target key end

     0   :  { %s1711_s17 = smov 0   ;;  %s1843_s0 = inlined_call_operand.vmem [shape: bf16[2,24,24], index: 0, kind: input, shape index: {}]   ;;  %s1844_s1 = inlined_call_operand.vmem [shape: f32[2,32,16], index: 1, kind: input, shape index: {}]   ;;  %s1845_s2 = inlined_call_operand.vmem [shape: f32[2,32,1], index: 2, kind: input, shape index: {}]   ;;  %s1846_s3 = inlined_call_operand.vmem [shape: f32[2,32,32], index: 3, kind: input, shape index: {}]   ;;  %s1847_s4 = inlined_call_operand.vmem [shape: f32[2,32,16], index: 4, kind: input, shape index: {}]   ;;  %s1848_s5 = inlined_call_operand.vmem [shape: f32[2,32,1], index: 5, kind: input, shape index: {}]   ;;  %s1849_s6 = inlined_call_operand.vmem [shape: f32[16,24], index: 6, kind: input, shape index: {}]   ;;  %s1850_s7 = inlined_call_operand.vmem [shape: f32[16,2], index: 7, kind: input, shape index: {}]   ;;  %s1851_s8 = inlined_call_operand.vmem [shape: f32[2,24], index: 8, kind: input, shape index: {}]   ;;  %s1852_s9 = inlined_call_operand.vmem [shape: f32[24,2], index: 9, kind: input, shape index: {}]   ;;  %s1853_s10 = inlined_call_operand.vmem [shape: f32[24,2], index: 10, kind: input, shape index: {}]   ;;  %s1854_s11 = inlined_call_operand.vmem [shape: f32[2,64,2], index: 11, kind: output, shape index: {}]  }
   0x1 LB: > { %s1412_s18 = sadd.s32 4294967295, %s1648_s17   ;;  %p1416_p0 = scmp.ge.s32.totalorder %s1648_s17, 1  ;;  %s1648_s17 = sphi %s1711_s17, %s21_s17  }
   0x2   : > { %p387_p1 = scmp.lt.s32.totalorder %s1648_s17, 3 }
   0x4   : > { %p388_p2 = pnand %p1416_p0, %p387_p1 }
   0x5   : > { %v491_v0 = vld [vmem:[%s1849_s6] sm:$0xff] (!%p388_p2)  ;;  %v492_v1 = vld [vmem:[%s1849_s6 + $0x8] sm:$0xff] (!%p388_p2)  ;;  %p452_p3 = scmp.lt.s32.totalorder (!%p388_p2), %s1412_s18, 1  ;;  %vm497_vm0 = vcmask (!%p388_p2), 130048   ;;  %vm637_vm1 = vcmask (!%p388_p2), 1043456   ;;  %v1650_v16 = vmov (!%p388_p2), 0  }
   0x6   : > { %391 = sbr.rel (%p388_p2) target bundleno = 1122 (0x462), region = 64  ;;  %v1598_v2 = vpack.c.bf16 (!%p388_p2), %v492_v1, %v491_v0  ;;  %v698_v10 = vld [vmem:[%s1850_s7] sm:$0xff] (!%p388_p2)  ;;  %v699_v11 = vld [vmem:[%s1850_s7 + $0x8] sm:$0xff] (!%p388_p2)  ;;  %1638 = vset.pattern.permute.xlu0 (!%p388_p2), %v1650_v16  ;;  %1639 = vset.pattern.permute.xlu1 (!%p388_p2), %v1650_v16  ;;  %vm630_vm2 = vcmask (!%p388_p2), 195584   ;;  %vm817_vm3 = vcmask (!%p388_p2), 1041408   ;;  %vm804_vm4 = vcmask (!%p388_p2), 15360  }
   0x7   : > { %v700_v12 = vmax.f32 (!%p388_p2), %v698_v10, 0.0  ;;  %v701_v13 = vmax.f32 (!%p388_p2), %v699_v11, 0.0  ;;  %v803_v34 = vld [vmem:[%s1851_s8] sm:$0x3] (!%p388_p2)  ;;  %vm906_vm5 = vcmask (!%p388_p2), 261120   ;;  %v1190_v59 = vld [vmem:[%s1853_s10 + $0x8] sm:$0xff] (!%p388_p2) }
   0x8   : > { %1599 = vmatprep.subr.bf16.mxu0 (!%p388_p2), %v1598_v2  ;;  %v1189_v58 = vld [vmem:[%s1853_s10] sm:$0xff] (!%p388_p2)  ;;  %v1191_v63 = vld [vmem:[%s1853_s10 + $0x10] sm:$0xff] (!%p388_p2) }
   0x9   : > { %1601 = vmatpush3.bf16.msra.mxu0 (!%p388_p2), %v1598_v2  ;;  %v1602_v14 = vpack.c.bf16 (!%p388_p2), %v701_v13, %v700_v12  ;;  %v1618_v60 = vpack.c.bf16 (!%p388_p2), %v1190_v59, %v1189_v58  ;;  %v1089_v11 = vld [vmem:[%s1852_s9] sm:$0xff] (!%p388_p2)  ;;  %v1090_v12 = vld [vmem:[%s1852_s9 + $0x8] sm:$0xff] (!%p388_p2) }
   0xa   : > { %v1614_v13 = vpack.c.bf16 (!%p388_p2), %v1090_v12, %v1089_v11 }
   0xb   : > { %1603 = vmatprep.subr.bf16.mxu0 (!%p388_p2), %v1602_v14 }
   0xd   : > { %s1856_s18 = smov (!%p452_p3, %s1412_s18), 1 }
   0xe   : > { %s1728_s23 = sshll.u32 %s1856_s18, 5  ;;  %s1628_s27 = smul.u32 12, %s1856_s18 }
   0xf   : > { %s461_s26 = scalar_lea.vmem %s1844_s1, %s1728_s23  ;;  %s476_s20 = scalar_lea.vmem %s1847_s4, %s1728_s23 }
  0x10   : > { %v493_v3 = vld [vmem:[%s461_s26] sm:$0xff]  ;;  %v494_v4 = vld [vmem:[%s461_s26 + $0x8] sm:$0xff]  ;;  %v495_v5 = vld [vmem:[%s461_s26 + $0x10] sm:$0xff]  ;;  %s456_s30 = scalar_lea.vmem %s1843_s0, %s1628_s27  ;;  %s466_s24 = scalar_lea.vmem %s1845_s2, %s1728_s23 }
  0x11   : > { %1520 = vmatprep.mubr.msk.f32.mxu0 %vm497_vm0, %v493_v3  ;;  %v496_v6 = vld [vmem:[%s461_s26 + $0x18] sm:$0xff]  ;;  %v1640_v7 = vld [vmem:[%s456_s30] sm:$0xff]   ;;  %v1641_v8 = vld [vmem:[%s456_s30 + $0x8] ss:$0 sps:$4 sm:$0xff]   ;;  %s481_s27 = scalar_lea.vmem %s1848_s5, %s1728_s23  ;;  %s1780_s13 = scalar_lea.vmem %s1846_s3, %s1728_s23 }
  0x12   : > { %1521 = vmatmul.mubr.msk.f32.vlgmr.msra.gmra.mrb[0].mxu0 %vm497_vm0, %v494_v4  ;;  %1526 = vmatprep.subr.bf16.mxu1 %v1640_v7  ;;  %v639_v9 = vsel %vm637_vm1, %v1641_v8, 0  ;;  %v694_v15 = vld [vmem:[%s476_s20] sm:$0xff]  ;;  %v695_v17 = vld [vmem:[%s476_s20 + $0x8] sm:$0xff]  ;;  %v599_v19 = vld [vmem:[%s466_s24 + $0x10] sm:$0xff]  ;;  %s1468_s21 = sshll.u32 %s1856_s18, 6 }
  0x13   : > { %1523 = vmatprep.mubr.msk.f32.mxu0 %vm497_vm0, %v495_v5  ;;  %1527 = vmatpush3.bf16.msra.mxu1 %v1640_v7  ;;  %v597_v18 = vld [vmem:[%s466_s24] sm:$0xff]  ;;  %v696_v20 = vld [vmem:[%s476_s20 + $0x10] sm:$0xff]  ;;  %v598_v21 = vld [vmem:[%s466_s24 + $0x8] sm:$0xff]  ;;  %s1808_s25 = scalar_lea.vmem %s1854_s11, %s1468_s21 }
  0x14   : > { %1626 = vmatprep.subr.msk.bf16.mxu1 %vm637_vm1, %v1641_v8  ;;  %1605 = vmatpush3.bf16.msra.mxu0 %v1602_v14  ;;  %v600_v22 = vld [vmem:[%s466_s24 + $0x18] sm:$0xff]  ;;  %v1006_v24 = vld [vmem:[%s481_s27] sm:$0xff]  ;;  %v1007_v25 = vld [vmem:[%s481_s27 + $0x8] sm:$0xff] }
  0x15   : > { %603 = vperm.xlu0 %1638, %v597_v18   ;;  %613 = vperm.xlu1 %1639, %v599_v19   ;;  %v697_v23 = vld [vmem:[%s476_s20 + $0x18] sm:$0xff]  ;;  %v1008_v26 = vld [vmem:[%s481_s27 + $0x10] sm:$0xff]  ;;  %v799_v39 = vld [vmem:[%s1780_s13] sm:$0xff] }
  0x16   : > { %1524 = vmatmul.mubr.msk.f32.gmra.mrb[2].mxu0 %vm497_vm0, %v496_v6  ;;  %1566 = vmatprep.subr.bf16.mxu0 %v1640_v7  ;;  %v1009_v27 = vld [vmem:[%s481_s27 + $0x18] sm:$0xff]  ;;  %v800_v61 = vld [vmem:[%s1780_s13 + $0x8] sm:$0xff]  ;;  %v801_v62 = vld [vmem:[%s1780_s13 + $0x10] sm:$0xff] }
  0x17   : > { %1529 = vmatpush3.bf16.msra.mxu1 %v639_v9  ;;  %1538 = vmatprep.mubr.msk.f32.mxu0 %vm497_vm0, %v694_v15  ;;  %v802_v0 = vld [vmem:[%s1780_s13 + $0x18] sm:$0xff]  ;;  %v1091_v14 = vld [vmem:[%s1852_s9 + $0x10] sm:$0xff] }
  0x18   : > { %1544 = vmatprep.subr.msk.mxu1 %vm817_vm3, %v803_v34 }
  0x19   : > { %608 = vperm.xlu0 %1638, %v598_v21   ;;  %618 = vperm.xlu1 %1639, %v600_v22  }
  0x1a   : > { %1539 = vmatmul.mubr.msk.f32.vlgmr.msra.gmra.mrb[4].mxu0 %vm497_vm0, %v695_v17 }
  0x1b   : > { %1541 = vmatprep.mubr.msk.f32.mxu0 %vm497_vm0, %v696_v20  ;;  %1567 = vmatpush3.bf16.msra.mxu0 %v1640_v7 }
  0x1c   : > { %1627 = vmatprep.subr.msk.bf16.mxu0 %vm637_vm1, %v1641_v8 }
  0x1d   : > { %1012 = vperm.xlu0 %1638, %v1006_v24   ;;  %1017 = vperm.xlu1 %1639, %v1007_v25  }
  0x1e   : > { %1542 = vmatmul.mubr.msk.f32.gmra.mrb[6].mxu0 %vm497_vm0, %v697_v23 }
  0x1f   : > { %1569 = vmatpush3.bf16.msra.mxu0 %v639_v9 }
  0x20   : > { %1615 = vmatprep.subr.bf16.mxu0 %v1614_v13 }
  0x21   : > { %1022 = vperm.xlu0 %1638, %v1008_v26   ;;  %1027 = vperm.xlu1 %1639, %v1009_v27  }
  0x94   : > { %v614_v40 = vpop.permute.xlu1 %613  ;;  %v604_v41 = vpop.permute.xlu0 %603 }
  0x98   : > { %v619_v45 = vpop.permute.xlu1 %618  ;;  %v609_v48 = vpop.permute.xlu0 %608 }
  0x9c   : > { %v1013_v15 = vpop.permute.xlu0 %1012  ;;  %v1018_v16 = vpop.permute.xlu1 %1017 }
  0xa0   : > { %v1023_v19 = vpop.permute.xlu0 %1022  ;;  %v1028_v26 = vpop.permute.xlu1 %1027 }
  0xe5   : > { %v1522_v28 = vpop.f32.mrb[0].mxu0 }
  0xe6   : > { %v576_v29 = vpop.f32.mrb[1].mxu0 }
  0xe7   : > { %v595_v30 = vpack.c.bf16 %v1522_v28, %v576_v29 }
  0xe9   : > { %v1525_v31 = vpop.f32.mrb[2].mxu0  ;;  %1530 = vmatprep.mubr.msk.bf16.mxu1 %vm630_vm2, %v595_v30 }
  0xea   : > { %v586_v32 = vpop.f32.mrb[3].mxu0 }
  0xeb   : > { %v596_v33 = vpack.c.bf16 %v1525_v31, %v586_v32 }
  0xed   : > { %1531 = vmatmul.mubr.msk.bf16.vlgmr.msra.gmra.mrb[0].mxu1 %vm630_vm2, %v596_v33  ;;  %v1540_v35 = vpop.f32.mrb[4].mxu0 }
  0xee   : > { %v780_v36 = vpop.f32.mrb[5].mxu0  ;;  %1545 = vmatpush3.msk.msra.mxu1 %vm817_vm3, %v803_v34 }
  0xef   : > { %1546 = vmatprep.mubr.msk.f32.mxu1 %vm804_vm4, %v780_v36 }
  0xf1   : > { %v1543_v37 = vpop.f32.mrb[6].mxu0 }
  0xf2   : > { %v790_v38 = vpop.f32.mrb[7].mxu0 }
  0xf5   : > { %1547 = vmatmul.mubr.msk.f32.vlgmr.msra.gmra.mrb[4].mxu1 %vm804_vm4, %v1540_v35 }
  0xf6   : > { %1549 = vmatprep.mubr.msk.f32.mxu1 %vm804_vm4, %v790_v38 }
  0xf9   : > { %1550 = vmatmul.mubr.msk.f32.gmra.mrb[6].mxu1 %vm804_vm4, %v1543_v37 }
  0xfa   : > { %1560 = vmatprep.mubr.msk.f32.mxu1 %vm906_vm5, %v799_v39 }
 0x1c0   : > { %v1532_v42 = vpop.f32.mrb[0].mxu1 }
 0x1c1   : > { %v684_v43 = vadd.f32 %v1532_v42, %v614_v40  ;;  %v675_v44 = vpop.f32.mrb[1].mxu1 }
 0x1c2   : > { %v676_v46 = vadd.f32 %v675_v44, %v604_v41  ;;  %v1533_v47 = vpop.f32.mrb[2].mxu1 }
 0x1c3   : > { %v687_v49 = vadd.f32 %v1533_v47, %v619_v45  ;;  %v678_v50 = vpop.f32.mrb[3].mxu1  ;;  %v692_v52 = vmax.f32 %v684_v43, 0.0 }
 0x1c4   : > { %v679_v51 = vadd.f32 %v678_v50, %v609_v48  ;;  %v690_v54 = vmax.f32 %v676_v46, 0.0 }
 0x1c5   : > { %v693_v53 = vmax.f32 %v687_v49, 0.0 }
 0x1c6   : > { %v691_v55 = vmax.f32 %v679_v51, 0.0 }
 0x1c7   : > { %v1610_v56 = vpack.c.bf16 %v693_v53, %v692_v52 }
 0x1c8   : > { %v1606_v57 = vpack.c.bf16 %v691_v55, %v690_v54 }
 0x1ca   : > { %1607 = vmatprep.subr.bf16.mxu1 %v1606_v57 }
 0x1cb   : > { %1609 = vmatpush3.bf16.msra.mxu1 %v1606_v57 }
 0x1cc   : > { %1611 = vmatprep.subr.bf16.mxu1 %v1610_v56 }
 0x1cf   : > { %1613 = vmatpush3.bf16.msra.mxu1 %v1610_v56 }
 0x1d0   : > { %1619 = vmatprep.subr.bf16.mxu1 %v1618_v60 }
 0x1d2   : > { %1561 = vmatmul.mubr.msk.f32.vlgmr.msra.gmra.mrb[4].mxu1 %vm906_vm5, %v800_v61 }
 0x1d3   : > { %1563 = vmatprep.mubr.msk.f32.mxu1 %vm906_vm5, %v801_v62  ;;  %1621 = vmatpush3.bf16.msra.mxu1 %v1618_v60 }
 0x1d4   : > { %1590 = vmatprep.subr.mxu1 %v1191_v63 }
 0x1d6   : > { %1564 = vmatmul.mubr.msk.f32.gmra.mrb[6].mxu1 %vm906_vm5, %v802_v0 }
 0x1d7   : > { %1592 = vmatprep.mubr.msk.f32.mxu1 %vm630_vm2, %v676_v46  ;;  %1591 = vmatpush3.msra.mxu1 %v1191_v63 }
 0x1da   : > { %1593 = vmatmul.mubr.msk.f32.vlgmr.msra.gmra.mrb[8].mxu1 %vm630_vm2, %v679_v51 }
 0x1db   : > { %1595 = vmatprep.mubr.msk.f32.mxu1 %vm630_vm2, %v684_v43 }
 0x1de   : > { %1596 = vmatmul.mubr.msk.f32.gmra.mrb[10].mxu1 %vm630_vm2, %v687_v49 }
 0x2a5   : > { %v1562_v1 = vpop.f32.mrb[4].mxu1 }
 0x2a6   : > { %v985_v2 = vpop.f32.mrb[5].mxu1 }
 0x2a7   : > { %v1004_v3 = vpack.c.bf16 %v1562_v1, %v985_v2 }
 0x2a9   : > { %v1565_v4 = vpop.f32.mrb[6].mxu1  ;;  %1570 = vmatprep.mubr.msk.bf16.mxu0 %vm630_vm2, %v1004_v3 }
 0x2aa   : > { %v995_v5 = vpop.f32.mrb[7].mxu1 }
 0x2ab   : > { %v1005_v6 = vpack.c.bf16 %v1565_v4, %v995_v5 }
 0x2ad   : > { %1571 = vmatmul.mubr.msk.bf16.vlgmr.msra.gmra.mrb[8].mxu0 %vm630_vm2, %v1005_v6  ;;  %v1594_v7 = vpop.f32.mrb[8].mxu1 }
 0x2ae   : > { %1294 = vst.msk [vmem:[%s1808_s25 + $0x28] sm:$0xff] %vm804_vm4, %v1594_v7  ;;  %v1270_v8 = vpop.f32.mrb[9].mxu1  ;;  %1617 = vmatpush3.bf16.msra.mxu0 %v1614_v13 }
 0x2af   : > { %1293 = vst.msk [vmem:[%s1808_s25 + $0x20] sm:$0xff] %vm804_vm4, %v1270_v8  ;;  %1578 = vmatprep.subr.mxu0 %v1091_v14 }
 0x2b1   : > { %v1597_v9 = vpop.f32.mrb[10].mxu1 }
 0x2b2   : > { %1296 = vst.msk [vmem:[%s1808_s25 + $0x38] sm:$0xff] %vm804_vm4, %v1597_v9  ;;  %v1280_v10 = vpop.f32.mrb[11].mxu1  ;;  %1579 = vmatpush3.msra.mxu0 %v1091_v14 }
 0x2b3   : > { %1295 = vst.msk [vmem:[%s1808_s25 + $0x30] sm:$0xff] %vm804_vm4, %v1280_v10 }
 0x380   : > { %v1572_v17 = vpop.f32.mrb[8].mxu0 }
 0x381   : > { %v1070_v18 = vpop.f32.mrb[9].mxu0  ;;  %v1079_v22 = vadd.f32 %v1572_v17, %v1023_v19 }
 0x382   : > { %v1071_v20 = vadd.f32 %v1070_v18, %v1013_v15  ;;  %v1573_v21 = vpop.f32.mrb[10].mxu0 }
 0x383   : > { %v1073_v23 = vpop.f32.mrb[11].mxu0  ;;  %v1082_v27 = vadd.f32 %v1573_v21, %v1028_v26  ;;  %v1087_v29 = vmax.f32 %v1079_v22, 0.0 }
 0x384   : > { %v1085_v24 = vmax.f32 %v1071_v20, 0.0  ;;  %v1074_v25 = vadd.f32 %v1073_v23, %v1018_v16 }
 0x385   : > { %v1088_v30 = vmax.f32 %v1082_v27, 0.0 }
 0x386   : > { %v1086_v28 = vmax.f32 %v1074_v25, 0.0  ;;  %1580 = vmatprep.mubr.msk.f32.mxu0 %vm630_vm2, %v1085_v24 }
 0x388   : > { %1581 = vmatmul.mubr.msk.f32.vlgmr.msra.gmra.mrb[12].mxu0 %vm630_vm2, %v1086_v28 }
 0x389   : > { %1583 = vmatprep.mubr.msk.f32.mxu0 %vm630_vm2, %v1087_v29 }
 0x38c   : > { %1584 = vmatmul.mubr.msk.f32.gmra.mrb[14].mxu0 %vm630_vm2, %v1088_v30 }
 0x45b   : > { %v1582_v31 = vpop.f32.mrb[12].mxu0 }
 0x45c   : > { %1290 = vst.msk [vmem:[%s1808_s25 + $0x8] sm:$0xff] %vm804_vm4, %v1582_v31  ;;  %v1170_v32 = vpop.f32.mrb[13].mxu0 }
 0x45d   : > { %1289 = vst.msk [vmem:[%s1808_s25] sm:$0xff] %vm804_vm4, %v1170_v32 }
 0x45f   : > { %v1585_v33 = vpop.f32.mrb[14].mxu0 }
 0x460   : > { %1292 = vst.msk [vmem:[%s1808_s25 + $0x18] sm:$0xff] %vm804_vm4, %v1585_v33  ;;  %v1180_v34 = vpop.f32.mrb[15].mxu0 }
 0x461   : > { %1291 = vst.msk [vmem:[%s1808_s25 + $0x10] sm:$0xff] %vm804_vm4, %v1180_v34 }
 0x462 PF: > { %s21_s17 = sadd.s32 1, %s1648_s17  }
 0x463   : > { %p18_p4 = scmp.ge.s32.totalorder %s21_s17, 4  }
 0x465   :  { %20 = sbr.rel (!%p18_p4) target bundleno = 1 (0x1), region = 109 }

</bundles_post_ra>
